<compile_context>
chip_gen: v7x
topology: tpu7x:2x2x1
jax: 0.10.0
libtpu: 0.0.40
codegen_flags: <defaults>
</compile_context>

<pallas_src>
import jax
import jax.numpy as jnp
from jax.experimental import pallas as pl
from jax.experimental.pallas import tpu as pltpu


def _round_up(n: int, m: int) -> int:
    return ((n + m - 1) // m) * m


def shallow_nn_kernel(x_ref, w1_ref, b1_ref, w2_ref, b2_ref, o_ref):
    # linear1: (TILE_B, D) @ (D, H) on the MXU with f32 accumulation
    # (x / W1 arrive as bf16 from the wrapper).
    z1 = jnp.dot(x_ref[...], w1_ref[...], preferred_element_type=jnp.float32)
    a1 = jnp.tanh(z1 + b1_ref[...])                       # (TILE_B, H), f32 (VPU/EUP)
    # linear2 has out_features == 1: an MXU matmul would use a single result
    # lane, so compute it as a VPU multiply + cross-lane reduction instead.
    z2 = jnp.sum(a1 * w2_ref[...], axis=-1, keepdims=True) + b2_ref[0, 0]
    o_ref[...] = jax.nn.sigmoid(z2).astype(o_ref.dtype)   # (TILE_B, 1)


def shallow_nn_forward(x, w1_t, b1, w2, b2, *, block_batch=1024,
                       stream_dtype=jnp.bfloat16):
    """Forward pass of ShallowNN.

    x:    (B, D)   input activations (streamed to the kernel as `stream_dtype`)
    w1_t: (D, H)   linear1.weight transposed (in_features, out_features)
    b1:   (1, H)   linear1.bias
    w2:   (1, H)   linear2.weight in PyTorch layout (out_features=1, in_features=H)
    b2:   (1, 1)   linear2.bias
    returns (B, 1) float32 == sigmoid(tanh(x @ W1^T + b1) @ W2^T + b2)
    """
    B, D = x.shape
    H = w1_t.shape[1]

    # Large batch tiles amortize the ~0.35 us per-grid-step overhead, but never
    # tile larger than the (8-padded) batch itself for small problems.
    tile_b = min(_round_up(block_batch, 8), _round_up(B, 8))
    b_pad = _round_up(B, tile_b)

    x_in = x.astype(stream_dtype)
    w1_in = w1_t.astype(stream_dtype)
    if b_pad != B:
        x_in = jnp.pad(x_in, ((0, b_pad - B), (0, 0)))

    grid = (pl.cdiv(b_pad, tile_b),)

    out = pl.pallas_call(
        shallow_nn_kernel,
        out_shape=jax.ShapeDtypeStruct((b_pad, 1), jnp.float32),
        grid=grid,
        in_specs=[
            # x: streamed per batch tile (Pallas auto double-buffers this DMA).
            pl.BlockSpec((tile_b, D), lambda i: (i, 0)),
            # Weights/biases: constant index_map -> DMA'd once, kept resident.
            pl.BlockSpec((D, H), lambda i: (0, 0)),
            pl.BlockSpec((1, H), lambda i: (0, 0)),
            pl.BlockSpec((1, H), lambda i: (0, 0)),
            # b2 is a single scalar -> SMEM; no (8,128) VMEM tile, no pipelining.
            pl.BlockSpec(memory_space=pltpu.MemorySpace.SMEM),
        ],
        out_specs=pl.BlockSpec((tile_b, 1), lambda i: (i, 0)),
        compiler_params=pltpu.CompilerParams(
            # Batch tiles are independent: shard across TensorCores where
            # available (v7x has 2 TCs per chip).
            dimension_semantics=("parallel",),
            vmem_limit_bytes=32 * 1024 * 1024,
        ),
    )(x_in, w1_in, b1, w2, b2)

    return out[:B]


def init_params(key, input_dim, hidden_dim):
    """Deterministic init mirroring nn.Linear's U(-1/sqrt(fan_in), 1/sqrt(fan_in))."""
    k1, k2, k3, k4 = jax.random.split(key, 4)
    lim1 = 1.0 / float(input_dim) ** 0.5
    lim2 = 1.0 / float(hidden_dim) ** 0.5
    # linear1.weight stored transposed: (in_features, out_features)
    w1_t = jax.random.uniform(k1, (input_dim, hidden_dim), jnp.float32, -lim1, lim1)
    b1 = jax.random.uniform(k2, (1, hidden_dim), jnp.float32, -lim1, lim1)
    # linear2.weight kept in its PyTorch (out_features=1, in_features=H) layout.
    w2 = jax.random.uniform(k3, (1, hidden_dim), jnp.float32, -lim2, lim2)
    b2 = jax.random.uniform(k4, (1, 1), jnp.float32, -lim2, lim2)
    return w1_t, b1, w2, b2


if __name__ == "__main__":
    input_dim = 16
    hidden_dim = 32
    batch = 300          # not a multiple of the tile -> exercises padding + multi-tile grid
    block_batch = 128    # small tile for the demo; production default is 1024

    key = jax.random.PRNGKey(0)
    k_x, k_p = jax.random.split(key)
    x = jax.random.normal(k_x, (batch, input_dim), dtype=jnp.float32)
    w1_t, b1, w2, b2 = init_params(k_p, input_dim, hidden_dim)

    out = shallow_nn_forward(x, w1_t, b1, w2, b2, block_batch=block_batch)
    out = jax.block_until_ready(out)

    # Pure-JAX reference using the same bf16 rounding of the streamed operands.
    x_bf = x.astype(jnp.bfloat16).astype(jnp.float32)
    w1_bf = w1_t.astype(jnp.bfloat16).astype(jnp.float32)
    a1 = jnp.tanh(x_bf @ w1_bf + b1)
    ref = jax.nn.sigmoid(jnp.sum(a1 * w2, axis=-1, keepdims=True) + b2[0, 0])

    assert out.shape == (batch, 1)
    assert bool(jnp.allclose(out, ref, atol=1e-3, rtol=1e-3)), (
        float(jnp.max(jnp.abs(out - ref))))
    print("KERNEL_OK")
</pallas_src>

<mosaic_0001>
module attributes {stable_mosaic.version = 11 : i64} {
  func.func @shallow_nn_kernel(%arg0: i32, %arg1: memref<128x16xbf16, #tpu.memory_space<vmem>>, %arg2: memref<16x32xbf16, #tpu.memory_space<vmem>>, %arg3: memref<1x32xf32, #tpu.memory_space<vmem>>, %arg4: memref<1x32xf32, #tpu.memory_space<vmem>>, %arg5: memref<1x1xf32, #tpu.memory_space<smem>>, %arg6: memref<128x1xf32, #tpu.memory_space<vmem>>) attributes {dimension_semantics = [#tpu.dimension_semantics<parallel>], iteration_bounds = array<i64: 3>, scalar_prefetch = 0 : i64, scratch_operands = 0 : i64, tpu.core_type = #tpu.core_type<tc>, window_params = [{transform_indices = @transform_0, window_bounds = array<i64: 128, 16>}, {pipeline_mode = #tpu.pipeline_mode<synchronous>, transform_indices = @transform_1, window_bounds = array<i64: 16, 32>}, {pipeline_mode = #tpu.pipeline_mode<synchronous>, transform_indices = @transform_2, window_bounds = array<i64: 1, 32>}, {pipeline_mode = #tpu.pipeline_mode<synchronous>, transform_indices = @transform_3, window_bounds = array<i64: 1, 32>}, {transform_indices = @transform_4, window_bounds = array<i64: 1, 1>}, {transform_indices = @transform_5, window_bounds = array<i64: 128, 1>}]} {
    %c0 = arith.constant 0 : index
    %c0_0 = arith.constant 0 : index
    %0 = vector.load %arg1[%c0, %c0_0] : memref<128x16xbf16, #tpu.memory_space<vmem>>, vector<128x16xbf16>
    %c0_1 = arith.constant 0 : index
    %c0_2 = arith.constant 0 : index
    %1 = vector.load %arg2[%c0_1, %c0_2] : memref<16x32xbf16, #tpu.memory_space<vmem>>, vector<16x32xbf16>
    %cst = arith.constant dense<0.000000e+00> : vector<128x32xf32>
    %2 = tpu.matmul %0, %1, %cst {dimension_numbers = #tpu.dot_dimension_numbers<[1], [0], [0], [1], [0, 0, 1, 1], [], []>} : vector<128x16xbf16>, vector<16x32xbf16>, vector<128x32xf32> -> vector<128x32xf32>
    %c0_3 = arith.constant 0 : index
    %c0_4 = arith.constant 0 : index
    %3 = vector.load %arg3[%c0_3, %c0_4] : memref<1x32xf32, #tpu.memory_space<vmem>>, vector<1x32xf32>
    %4 = vector.broadcast %3 : vector<1x32xf32> to vector<128x32xf32>
    %5 = arith.addf %2, %4 : vector<128x32xf32>
    %6 = math.tanh %5 : vector<128x32xf32>
    %c0_5 = arith.constant 0 : index
    %c0_6 = arith.constant 0 : index
    %7 = vector.load %arg4[%c0_5, %c0_6] : memref<1x32xf32, #tpu.memory_space<vmem>>, vector<1x32xf32>
    %8 = vector.broadcast %7 : vector<1x32xf32> to vector<128x32xf32>
    %9 = arith.mulf %6, %8 : vector<128x32xf32>
    %cst_7 = arith.constant dense<0.000000e+00> : vector<128xf32>
    %10 = vector.multi_reduction <add>, %9, %cst_7 [1] : vector<128x32xf32> to vector<128xf32>
    %11 = vector.shape_cast %10 : vector<128xf32> to vector<128x1xf32>
    %c0_8 = arith.constant 0 : index
    %c0_9 = arith.constant 0 : index
    %12 = memref.load %arg5[%c0_8, %c0_9] : memref<1x1xf32, #tpu.memory_space<smem>>
    %13 = vector.broadcast %12 : f32 to vector<128x1xf32>
    %14 = arith.addf %11, %13 : vector<128x1xf32>
    %15 = arith.negf %14 : vector<128x1xf32>
    %16 = math.exp %15 : vector<128x1xf32>
    %cst_10 = arith.constant 1.000000e+00 : f32
    %17 = vector.broadcast %cst_10 : f32 to vector<128x1xf32>
    %18 = arith.addf %17, %16 : vector<128x1xf32>
    %19 = arith.divf %17, %18 : vector<128x1xf32>
    %c0_11 = arith.constant 0 : index
    %c0_12 = arith.constant 0 : index
    %20 = vector.load %arg6[%c0_11, %c0_12] : memref<128x1xf32, #tpu.memory_space<vmem>>, vector<128x1xf32>
    tpu.vector_store %arg6[%c0_11, %c0_12], %19 {strides = array<i32>} : memref<128x1xf32, #tpu.memory_space<vmem>>, vector<128x1xf32>,
    return
  }
  func.func @transform_0(%arg0: i32) -> (i32, i32) {
    %c0_i32 = arith.constant 0 : i32
    %c0_i32_0 = arith.constant 0 : i32
    return %arg0, %c0_i32 : i32, i32
  }
  func.func @transform_1(%arg0: i32) -> (i32, i32) {
    %c0_i32 = arith.constant 0 : i32
    %c0_i32_0 = arith.constant 0 : i32
    %c0_i32_1 = arith.constant 0 : i32
    return %c0_i32, %c0_i32_0 : i32, i32
  }
  func.func @transform_2(%arg0: i32) -> (i32, i32) {
    %c0_i32 = arith.constant 0 : i32
    %c0_i32_0 = arith.constant 0 : i32
    %c0_i32_1 = arith.constant 0 : i32
    return %c0_i32, %c0_i32_0 : i32, i32
  }
  func.func @transform_3(%arg0: i32) -> (i32, i32) {
    %c0_i32 = arith.constant 0 : i32
    %c0_i32_0 = arith.constant 0 : i32
    %c0_i32_1 = arith.constant 0 : i32
    return %c0_i32, %c0_i32_0 : i32, i32
  }
  func.func @transform_4(%arg0: i32) -> (i32, i32) {
    %c0_i32 = arith.constant 0 : i32
    %c0_i32_0 = arith.constant 0 : i32
    %c0_i32_1 = arith.constant 0 : i32
    return %c0_i32, %c0_i32_0 : i32, i32
  }
  func.func @transform_5(%arg0: i32) -> (i32, i32) {
    %c0_i32 = arith.constant 0 : i32
    %c0_i32_0 = arith.constant 0 : i32
    return %arg0, %c0_i32 : i32, i32
  }
}

</mosaic_0001>

<bundles_post_ra>
// kernel: tpu_custom_call.1
= control target key start
LH: loop header
LB: loop body
LE: loop exit
PB: predicated region body
PF: predicated region fallthrough
CT: control target
= control target key end

     0   :  { %s927_s20 = smov 0   ;;  %s1069_s0 = inlined_call_operand.vmem [shape: bf16[384,16], index: 0, kind: input, shape index: {}]   ;;  %s1070_s1 = inlined_call_operand.vmem [shape: bf16[16,32], index: 1, kind: input, shape index: {}]   ;;  %s1071_s2 = inlined_call_operand.vmem [shape: f32[1,32], index: 2, kind: input, shape index: {}]   ;;  %s1072_s3 = inlined_call_operand.vmem [shape: f32[1,32], index: 3, kind: input, shape index: {}]   ;;  %s1073_s4 = inlined_call_operand.<no memory space> [shape: f32[1,1], index: 4, kind: input, shape index: {}]   ;;  %s1074_s5 = inlined_call_operand.vmem [shape: f32[384,1], index: 5, kind: output, shape index: {}]  }
   0x1   :  { %10 = sst [smem:[#allocation2]] %s1073_s4 }
   0x2 LB: > { %s698_s21 = sadd.s32 4294967295, %s892_s20   ;;  %p702_p0 = scmp.ge.s32.totalorder %s892_s20, 1  ;;  %s892_s20 = sphi %s927_s20, %s16_s20  }
   0x3   : > { %p189_p1 = scmp.lt.s32.totalorder %s892_s20, 4 }
   0x5   : > { %p190_p2 = pnand %p702_p0, %p189_p1 }
   0x6   : > { %v781_v0 = vld [vmem:[%s1070_s1] sm:$0xff] (!%p190_p2)   ;;  %s703_s4 = sshll.u32 (!%p190_p2), %s698_s21, 4  ;;  %vm301_vm0 = vcmask (!%p190_p2), 130048   ;;  %vm462_vm1 = vcmask (!%p190_p2), 261120   ;;  %s511_s7 = sld [smem:[#allocation2]] (!%p190_p2)  ;;  %vm625_vm2 = vcmask (!%p190_p2), 7168  }
   0x7   : > { %193 = sbr.rel (%p190_p2) target bundleno = 449 (0x1c1), region = 40  ;;  %p218_p3 = scmp.lt.s32.totalorder (!%p190_p2), %s703_s4, 47  ;;  %753 = vmatprep.subr.bf16.mxu0 (!%p190_p2), %v781_v0  ;;  %771 = vmatprep.subr.bf16.mxu1 (!%p190_p2), %v781_v0  ;;  %v955_v9 = vld [vmem:[%s1071_s2] ss:$0 sm:$0xff] (!%p190_p2) }
   0x8   : > { %754 = vmatpush3.bf16.msra.mxu0 (!%p190_p2), %v781_v0  ;;  %772 = vmatpush3.bf16.msra.mxu1 (!%p190_p2), %v781_v0  ;;  %v969_v33 = vld [vmem:[%s1072_s3] ss:$0 sm:$0xff] (!%p190_p2) }
   0xe   : > { %s1076_s4 = smov (!%p218_p3, %s703_s4), 47 }
   0xf   : > { %s704_s24 = sshll.u32 %s1076_s4, 2  ;;  %s706_s8 = sshll.u32 %s1076_s4, 3 }
  0x10   : > { %s221_s27 = scalar_lea.vmem %s1069_s0, %s704_s24  ;;  %s1029_s11 = scalar_lea.vmem %s1074_s5, %s706_s8 }
  0x11   : > { %v782_v1 = vld [vmem:[%s221_s27] sm:$0xff]   ;;  %v784_v3 = vld [vmem:[%s221_s27 + $0x8] sm:$0xff]   ;;  %v786_v5 = vld [vmem:[%s221_s27 + $0x10] sm:$0xff]  }
  0x12   : > { %v783_v2 = vld [vmem:[%s221_s27 + $0x20] sm:$0xff]   ;;  %755 = vmatprep.mubr.msk.bf16.mxu0 %vm301_vm0, %v782_v1  ;;  %v785_v4 = vld [vmem:[%s221_s27 + $0x28] sm:$0xff]   ;;  %v788_v6 = vld [vmem:[%s221_s27 + $0x30] sm:$0xff]  }
  0x13   : > { %763 = vmatprep.mubr.msk.bf16.mxu1 %vm301_vm0, %v783_v2  ;;  %756 = vmatmul.mubr.msk.bf16.vlgmr.msra.gmra.mrb[0].mxu0 %vm301_vm0, %v784_v3  ;;  %v787_v7 = vld [vmem:[%s221_s27 + $0x18] sm:$0xff]  }
  0x14   : > { %764 = vmatmul.mubr.msk.bf16.vlgmr.msra.gmra.mrb[0].mxu1 %vm301_vm0, %v785_v4  ;;  %759 = vmatprep.mubr.msk.bf16.mxu0 %vm301_vm0, %v786_v5  ;;  %v789_v8 = vld [vmem:[%s221_s27 + $0x38] sm:$0xff]  }
  0x15   : > { %767 = vmatprep.mubr.msk.bf16.mxu1 %vm301_vm0, %v788_v6 }
  0x1b   : > { %760 = vmatmul.mubr.msk.bf16.gmra.mrb[4].mxu0 %vm301_vm0, %v787_v7 }
  0x1c   : > { %768 = vmatmul.mubr.msk.bf16.gmra.mrb[4].mxu1 %vm301_vm0, %v789_v8 }
  0xe6   : > { %v757_v10 = vpop.f32.mrb[0].mxu0 }
  0xe7   : > { %v369_v11 = vadd.f32 %v757_v10, %v955_v9  ;;  %v765_v12 = vpop.f32.mrb[0].mxu1  ;;  %v360_v13 = vpop.f32.mrb[1].mxu0 }
  0xe8   : > { %v401_v14 = vadd.f32 %v765_v12, %v955_v9  ;;  %v361_v15 = vadd.f32 %v955_v9, %v360_v13  ;;  %v392_v16 = vpop.f32.mrb[1].mxu1  ;;  %v758_v17 = vpop.f32.mrb[2].mxu0 }
  0xe9   : > { %790 = vtanh.f32 %v369_v11  ;;  %v393_v18 = vadd.f32 %v955_v9, %v392_v16  ;;  %v372_v19 = vadd.f32 %v758_v17, %v955_v9  ;;  %v766_v20 = vpop.f32.mrb[2].mxu1  ;;  %v363_v21 = vpop.f32.mrb[3].mxu0 }
  0xea   : > { %792 = vtanh.f32 %v401_v14  ;;  %v404_v22 = vadd.f32 %v766_v20, %v955_v9  ;;  %v395_v23 = vpop.f32.mrb[3].mxu1  ;;  %v364_v25 = vadd.f32 %v955_v9, %v363_v21 }
  0xeb   : > { %794 = vtanh.f32 %v361_v15  ;;  %v396_v24 = vadd.f32 %v955_v9, %v395_v23 }
  0xec   : > { %796 = vtanh.f32 %v393_v18 }
  0xed   : > { %798 = vtanh.f32 %v372_v19 }
  0xee   : > { %800 = vtanh.f32 %v404_v22  ;;  %v761_v26 = vpop.f32.mrb[4].mxu0 }
  0xef   : > { %v376_v27 = vpop.f32.mrb[5].mxu0  ;;  %v769_v28 = vpop.f32.mrb[4].mxu1  ;;  %802 = vtanh.f32 %v396_v24  ;;  %v385_v35 = vadd.f32 %v761_v26, %v955_v9 }
  0xf0   : > { %v762_v29 = vpop.f32.mrb[6].mxu0  ;;  %v408_v30 = vpop.f32.mrb[5].mxu1  ;;  %804 = vtanh.f32 %v364_v25  ;;  %v377_v44 = vadd.f32 %v955_v9, %v376_v27  ;;  %v417_v60 = vadd.f32 %v769_v28, %v955_v9  ;;  %v1010_v27 = vstv %s511_s7 }
  0xf1   : > { %v388_v31 = vadd.f32 %v762_v29, %v955_v9  ;;  %v379_v32 = vpop.f32.mrb[7].mxu0  ;;  %v770_v34 = vpop.f32.mrb[6].mxu1  ;;  %v409_v52 = vadd.f32 %v955_v9, %v408_v30 }
  0xf2   : > { %v411_v36 = vpop.f32.mrb[7].mxu1  ;;  %v380_v41 = vadd.f32 %v955_v9, %v379_v32  ;;  %v420_v59 = vadd.f32 %v770_v34, %v955_v9 }
  0xf3   : > { %v791_v37 = vpop.eup %790  ;;  %806 = vtanh.f32 %v388_v31  ;;  %v412_v51 = vadd.f32 %v955_v9, %v411_v36 }
  0xf4   : > { %v793_v38 = vpop.eup %792  ;;  %v448_v39 = vmul.f32 %v791_v37, %v969_v33  ;;  %808 = vtanh.f32 %v385_v35 }
  0xf5   : > { %v795_v40 = vpop.eup %794  ;;  %v456_v42 = vmul.f32 %v793_v38, %v969_v33  ;;  %810 = vtanh.f32 %v380_v41 }
  0xf6   : > { %v797_v43 = vpop.eup %796  ;;  %v469_v45 = vsel %vm462_vm1, %v448_v39, 0.0  ;;  %v446_v48 = vmul.f32 %v795_v40, %v969_v33  ;;  %812 = vtanh.f32 %v377_v44 }
  0xf7   : > { %v799_v46 = vpop.eup %798  ;;  %v493_v47 = vsel %vm462_vm1, %v456_v42, 0.0  ;;  %470 = vadd.xlane.f32.xlu1 %v469_v45  ;;  %v454_v57 = vmul.f32 %v797_v43, %v969_v33  ;;  %814 = vtanh.f32 %v412_v51 }
  0xf8   : > { %v801_v49 = vpop.eup %800  ;;  %494 = vadd.xlane.f32.xlu0 %v493_v47  ;;  %v449_v50 = vmul.f32 %v799_v46, %v969_v33  ;;  %v463_v56 = vsel %vm462_vm1, %v446_v48, 0.0  ;;  %816 = vtanh.f32 %v409_v52 }
  0xf9   : > { %v457_v54 = vmul.f32 %v801_v49, %v969_v33  ;;  %v803_v55 = vpop.eup %802  ;;  %v487_v0 = vsel %vm462_vm1, %v454_v57, 0.0  ;;  %818 = vtanh.f32 %v420_v59 }
  0xfa   : > { %v472_v53 = vsel %vm462_vm1, %v449_v50, 0.0  ;;  %v805_v58 = vpop.eup %804  ;;  %v455_v62 = vmul.f32 %v803_v55, %v969_v33  ;;  %820 = vtanh.f32 %v417_v60 }
  0xfb   : > { %473 = vadd.xlane.f32.xlu1 %v472_v53  ;;  %v496_v61 = vsel %vm462_vm1, %v457_v54, 0.0  ;;  %v447_v1 = vmul.f32 %v805_v58, %v969_v33 }
  0xfc   : > { %464 = vadd.xlane.f32.xlu0 %v463_v56  ;;  %v490_v3 = vsel %vm462_vm1, %v455_v62, 0.0 }
  0xfd   : > { %v807_v63 = vpop.eup %806  ;;  %v466_v6 = vsel %vm462_vm1, %v447_v1, 0.0 }
  0xfe   : > { %v809_v2 = vpop.eup %808  ;;  %v453_v4 = vmul.f32 %v807_v63, %v969_v33 }
  0xff   : > { %497 = vadd.xlane.f32.xlu1 %v496_v61  ;;  %v811_v5 = vpop.eup %810  ;;  %v452_v7 = vmul.f32 %v809_v2, %v969_v33 }
 0x100   : > { %488 = vadd.xlane.f32.xlu0 %v487_v0  ;;  %v813_v8 = vpop.eup %812  ;;  %v484_v9 = vsel %vm462_vm1, %v453_v4, 0.0  ;;  %v451_v10 = vmul.f32 %v811_v5, %v969_v33 }
 0x101   : > { %v815_v11 = vpop.eup %814  ;;  %v481_v12 = vsel %vm462_vm1, %v452_v7, 0.0  ;;  %v450_v13 = vmul.f32 %v813_v8, %v969_v33 }
 0x102   : > { %v817_v14 = vpop.eup %816  ;;  %v478_v15 = vsel %vm462_vm1, %v451_v10, 0.0  ;;  %v459_v16 = vmul.f32 %v815_v11, %v969_v33 }
 0x103   : > { %491 = vadd.xlane.f32.xlu1 %v490_v3  ;;  %v819_v17 = vpop.eup %818  ;;  %v475_v18 = vsel %vm462_vm1, %v450_v13, 0.0  ;;  %v458_v19 = vmul.f32 %v817_v14, %v969_v33 }
 0x104   : > { %467 = vadd.xlane.f32.xlu0 %v466_v6  ;;  %v821_v20 = vpop.eup %820  ;;  %v502_v21 = vsel %vm462_vm1, %v459_v16, 0.0  ;;  %v461_v22 = vmul.f32 %v819_v17, %v969_v33 }
 0x105   : > { %v499_v23 = vsel %vm462_vm1, %v458_v19, 0.0  ;;  %v460_v24 = vmul.f32 %v821_v20, %v969_v33 }
 0x106   : > { %v508_v25 = vsel %vm462_vm1, %v461_v22, 0.0 }
 0x107   : > { %485 = vadd.xlane.f32.xlu1 %v484_v9  ;;  %v505_v26 = vsel %vm462_vm1, %v460_v24, 0.0 }
 0x108   : > { %482 = vadd.xlane.f32.xlu0 %v481_v12 }
 0x10b   : > { %479 = vadd.xlane.f32.xlu1 %v478_v15 }
 0x10c   : > { %476 = vadd.xlane.f32.xlu0 %v475_v18 }
 0x10f   : > { %503 = vadd.xlane.f32.xlu1 %v502_v21 }
 0x110   : > { %500 = vadd.xlane.f32.xlu0 %v499_v23 }
 0x113   : > { %509 = vadd.xlane.f32.xlu1 %v508_v25 }
 0x114   : > { %506 = vadd.xlane.f32.xlu0 %v505_v26 }
 0x184   : > { %v471_v28 = vpop.xlane.xlu1 %470 }
 0x185   : > { %v495_v29 = vpop.xlane.xlu0 %494  ;;  %v515_v30 = vadd.f32 %v1010_v27, %v471_v28 }
 0x186   : > { %v523_v31 = vadd.f32 %v1010_v27, %v495_v29 }
 0x187   : > { %v728_v32 = vmul.f32 -1.442695, %v515_v30 }
 0x188   : > { %v736_v34 = vmul.f32 -1.442695, %v523_v31  ;;  %v474_v35 = vpop.xlane.xlu1 %473 }
 0x189   : > { %822 = vpow2.f32 %v728_v32  ;;  %v516_v33 = vadd.f32 %v1010_v27, %v474_v35  ;;  %v465_v36 = vpop.xlane.xlu0 %464 }
 0x18a   : > { %824 = vpow2.f32 %v736_v34  ;;  %v513_v37 = vadd.f32 %v1010_v27, %v465_v36 }
 0x18b   : > { %v729_v38 = vmul.f32 -1.442695, %v516_v33 }
 0x18c   : > { %v726_v39 = vmul.f32 -1.442695, %v513_v37  ;;  %v498_v40 = vpop.xlane.xlu1 %497 }
 0x18d   : > { %826 = vpow2.f32 %v729_v38  ;;  %v524_v41 = vadd.f32 %v1010_v27, %v498_v40  ;;  %v489_v42 = vpop.xlane.xlu0 %488 }
 0x18e   : > { %828 = vpow2.f32 %v726_v39  ;;  %v521_v43 = vadd.f32 %v1010_v27, %v489_v42 }
 0x18f   : > { %v737_v44 = vmul.f32 -1.442695, %v524_v41 }
 0x190   : > { %v734_v45 = vmul.f32 -1.442695, %v521_v43  ;;  %v492_v46 = vpop.xlane.xlu1 %491 }
 0x191   : > { %830 = vpow2.f32 %v737_v44  ;;  %v522_v47 = vadd.f32 %v1010_v27, %v492_v46  ;;  %v468_v48 = vpop.xlane.xlu0 %467 }
 0x192   : > { %832 = vpow2.f32 %v734_v45  ;;  %v514_v49 = vadd.f32 %v1010_v27, %v468_v48 }
 0x193   : > { %v823_v50 = vpop.eup %822  ;;  %v735_v51 = vmul.f32 -1.442695, %v522_v47 }
 0x194   : > { %v825_v52 = vpop.eup %824  ;;  %v579_v53 = vadd.f32 1.0, %v823_v50  ;;  %v727_v54 = vmul.f32 -1.442695, %v514_v49  ;;  %v486_v55 = vpop.xlane.xlu1 %485 }
 0x195   : > { %v587_v56 = vadd.f32 1.0, %v825_v52  ;;  %834 = vpow2.f32 %v735_v51  ;;  %v520_v57 = vadd.f32 %v1010_v27, %v486_v55  ;;  %v483_v58 = vpop.xlane.xlu0 %482 }
 0x196   : > { %836 = vrcp.f32 %v579_v53  ;;  %v519_v59 = vadd.f32 %v1010_v27, %v483_v58 }
 0x197   : > { %v827_v60 = vpop.eup %826  ;;  %838 = vrcp.f32 %v587_v56  ;;  %v733_v61 = vmul.f32 -1.442695, %v520_v57 }
 0x198   : > { %v829_v62 = vpop.eup %828  ;;  %v580_v63 = vadd.f32 1.0, %v827_v60  ;;  %840 = vpow2.f32 %v727_v54  ;;  %v732_v0 = vmul.f32 -1.442695, %v519_v59  ;;  %v480_v1 = vpop.xlane.xlu1 %479 }
 0x199   : > { %v577_v2 = vadd.f32 1.0, %v829_v62  ;;  %842 = vpow2.f32 %v733_v61  ;;  %v518_v3 = vadd.f32 %v1010_v27, %v480_v1  ;;  %v477_v4 = vpop.xlane.xlu0 %476 }
 0x19a   : > { %844 = vrcp.f32 %v580_v63  ;;  %v517_v5 = vadd.f32 %v1010_v27, %v477_v4 }
 0x19b   : > { %v831_v6 = vpop.eup %830  ;;  %846 = vrcp.f32 %v577_v2  ;;  %v731_v7 = vmul.f32 -1.442695, %v518_v3 }
 0x19c   : > { %v833_v8 = vpop.eup %832  ;;  %v588_v9 = vadd.f32 1.0, %v831_v6  ;;  %848 = vpow2.f32 %v732_v0  ;;  %v730_v10 = vmul.f32 -1.442695, %v517_v5  ;;  %v504_v11 = vpop.xlane.xlu1 %503 }
 0x19d   : > { %v585_v12 = vadd.f32 1.0, %v833_v8  ;;  %850 = vpow2.f32 %v731_v7  ;;  %v526_v13 = vadd.f32 %v1010_v27, %v504_v11  ;;  %v501_v14 = vpop.xlane.xlu0 %500 }
 0x19e   : > { %852 = vrcp.f32 %v588_v9  ;;  %v525_v15 = vadd.f32 %v1010_v27, %v501_v14 }
 0x19f   : > { %v835_v16 = vpop.eup %834  ;;  %854 = vrcp.f32 %v585_v12  ;;  %v739_v17 = vmul.f32 -1.442695, %v526_v13 }
 0x1a0   : > { %v837_v18 = vpop.eup %836  ;;  %v586_v19 = vadd.f32 1.0, %v835_v16  ;;  %856 = vpow2.f32 %v730_v10  ;;  %v738_v20 = vmul.f32 -1.442695, %v525_v15  ;;  %v510_v21 = vpop.xlane.xlu1 %509 }
 0x1a1   : > { %v839_v22 = vpop.eup %838  ;;  %628 = vst.msk [vmem:[%s1029_s11 + $0x10] sm:$0xff] %vm625_vm2, %v837_v18  ;;  %858 = vpow2.f32 %v739_v17  ;;  %v528_v23 = vadd.f32 %v1010_v27, %v510_v21  ;;  %v507_v24 = vpop.xlane.xlu0 %506 }
 0x1a2   : > { %v841_v25 = vpop.eup %840  ;;  %636 = vst.msk [vmem:[%s1029_s11 + $0x50] sm:$0xff] %vm625_vm2, %v839_v22  ;;  %860 = vrcp.f32 %v586_v19  ;;  %v527_v26 = vadd.f32 %v1010_v27, %v507_v24 }
 0x1a3   : > { %v843_v28 = vpop.eup %842  ;;  %v578_v29 = vadd.f32 1.0, %v841_v25  ;;  %862 = vpow2.f32 %v738_v20  ;;  %v741_v30 = vmul.f32 -1.442695, %v528_v23 }
 0x1a4   : > { %v845_v31 = vpop.eup %844  ;;  %v584_v32 = vadd.f32 1.0, %v843_v28  ;;  %v740_v34 = vmul.f32 -1.442695, %v527_v26 }
 0x1a5   : > { %v847_v35 = vpop.eup %846  ;;  %629 = vst.msk [vmem:[%s1029_s11 + $0x18] sm:$0xff] %vm625_vm2, %v845_v31  ;;  %864 = vrcp.f32 %v578_v29 }
 0x1a6   : > { %v849_v33 = vpop.eup %848  ;;  %626 = vst.msk [vmem:[%s1029_s11] sm:$0xff] %vm625_vm2, %v847_v35  ;;  %866 = vrcp.f32 %v584_v32 }
 0x1a7   : > { %v851_v36 = vpop.eup %850  ;;  %v583_v37 = vadd.f32 1.0, %v849_v33  ;;  %868 = vpow2.f32 %v741_v30 }
 0x1a8   : > { %v853_v27 = vpop.eup %852  ;;  %v582_v38 = vadd.f32 1.0, %v851_v36  ;;  %870 = vpow2.f32 %v740_v34 }
 0x1a9   : > { %v855_v39 = vpop.eup %854  ;;  %637 = vst.msk [vmem:[%s1029_s11 + $0x58] sm:$0xff] %vm625_vm2, %v853_v27  ;;  %872 = vrcp.f32 %v583_v37 }
 0x1aa   : > { %v857_v40 = vpop.eup %856  ;;  %634 = vst.msk [vmem:[%s1029_s11 + $0x40] sm:$0xff] %vm625_vm2, %v855_v39  ;;  %874 = vrcp.f32 %v582_v38 }
 0x1ab   : > { %v859_v41 = vpop.eup %858  ;;  %v581_v42 = vadd.f32 1.0, %v857_v40 }
 0x1ac   : > { %v861_v43 = vpop.eup %860  ;;  %v590_v44 = vadd.f32 1.0, %v859_v41 }
 0x1ad   : > { %v863_v45 = vpop.eup %862  ;;  %635 = vst.msk [vmem:[%s1029_s11 + $0x48] sm:$0xff] %vm625_vm2, %v861_v43  ;;  %876 = vrcp.f32 %v581_v42 }
 0x1ae   : > { %878 = vrcp.f32 %v590_v44  ;;  %v589_v46 = vadd.f32 1.0, %v863_v45 }
 0x1af   : > { %v865_v47 = vpop.eup %864 }
 0x1b0   : > { %v867_v48 = vpop.eup %866  ;;  %627 = vst.msk [vmem:[%s1029_s11 + $0x8] sm:$0xff] %vm625_vm2, %v865_v47  ;;  %880 = vrcp.f32 %v589_v46 }
 0x1b1   : > { %v869_v49 = vpop.eup %868  ;;  %633 = vst.msk [vmem:[%s1029_s11 + $0x38] sm:$0xff] %vm625_vm2, %v867_v48 }
 0x1b2   : > { %v871_v50 = vpop.eup %870  ;;  %v592_v51 = vadd.f32 1.0, %v869_v49 }
 0x1b3   : > { %v873_v52 = vpop.eup %872  ;;  %v591_v53 = vadd.f32 1.0, %v871_v50 }
 0x1b4   : > { %v875_v54 = vpop.eup %874  ;;  %632 = vst.msk [vmem:[%s1029_s11 + $0x30] sm:$0xff] %vm625_vm2, %v873_v52  ;;  %882 = vrcp.f32 %v592_v51 }
 0x1b5   : > { %631 = vst.msk [vmem:[%s1029_s11 + $0x28] sm:$0xff] %vm625_vm2, %v875_v54  ;;  %884 = vrcp.f32 %v591_v53 }
 0x1b7   : > { %v877_v55 = vpop.eup %876 }
 0x1b8   : > { %v879_v56 = vpop.eup %878  ;;  %630 = vst.msk [vmem:[%s1029_s11 + $0x20] sm:$0xff] %vm625_vm2, %v877_v55 }
 0x1b9   : > { %639 = vst.msk [vmem:[%s1029_s11 + $0x68] sm:$0xff] %vm625_vm2, %v879_v56 }
 0x1ba   : > { %v881_v57 = vpop.eup %880 }
 0x1bb   : > { %638 = vst.msk [vmem:[%s1029_s11 + $0x60] sm:$0xff] %vm625_vm2, %v881_v57 }
 0x1be   : > { %v883_v58 = vpop.eup %882 }
 0x1bf   : > { %v885_v59 = vpop.eup %884  ;;  %641 = vst.msk [vmem:[%s1029_s11 + $0x78] sm:$0xff] %vm625_vm2, %v883_v58 }
 0x1c0   : > { %640 = vst.msk [vmem:[%s1029_s11 + $0x70] sm:$0xff] %vm625_vm2, %v885_v59 }
 0x1c1 PF: > { %s16_s20 = sadd.s32 1, %s892_s20  }
 0x1c2   : > { %p13_p4 = scmp.ge.s32.totalorder %s16_s20, 5  }
 0x1c4   :  { %15 = sbr.rel (!%p13_p4) target bundleno = 2 (0x2), region = 70 }

</bundles_post_ra>
